<compile_context>
chip_gen: v7x
topology: tpu7x:2x2x1
jax: 0.10.0
libtpu: 0.0.40
codegen_flags: <defaults>
</compile_context>

<pallas_src>
import math

import jax
import jax.numpy as jnp
from jax.experimental import pallas as pl
from jax.experimental.pallas import tpu as pltpu


def _attn_kernel(q_ref, k_ref, v_ref, mask_ref, o_ref):
    # Block shapes: q/k/v/o -> (bb, S, D); mask -> (1, S, S).
    scale = 1.0 / math.sqrt(q_ref.shape[-1])
    # bf16 MXU operands, f32 accumulation (scale folded into q first, in f32).
    q = (q_ref[...] * scale).astype(jnp.bfloat16)
    k = k_ref[...].astype(jnp.bfloat16)
    v = v_ref[...].astype(jnp.bfloat16)
    m = mask_ref[0]                   # (S, S), broadcasts over the batch block

    # Batched scores, contracting on the last (D) dims -> no explicit k.T.
    qk = jnp.einsum("bqd,bkd->bqk", q, k,
                    preferred_element_type=jnp.float32)      # (bb, S, S) f32
    qk = qk + m

    # Numerically-stable softmax along the last axis.
    qk_max = jnp.max(qk, axis=-1, keepdims=True)
    p = jnp.exp(qk - qk_max)
    denom = jnp.sum(p, axis=-1, keepdims=True)
    attn = p * pl.reciprocal(denom, approx=True)              # EUP vrcp (near free)

    # attn @ v (batched, MXU bf16 inputs with f32 accumulation).
    out = jnp.einsum("bqk,bkd->bqd", attn.astype(jnp.bfloat16), v,
                     preferred_element_type=jnp.float32)
    o_ref[...] = out.astype(o_ref.dtype)


def attention(q, k, v, mask):
    """q, k, v: (B, S, D) float32; mask: (1, S, S) float32 -> (B, S, D).

    Single grid step on all chips: at these sizes the kernel is launch /
    overhead-bound, so the whole batch (and any fused heads stacked on the
    leading axis) is processed in one invocation with the mask loaded once.
    """
    B, S, D = q.shape
    assert k.shape == (B, S, D) and v.shape == (B, S, D)
    assert mask.shape == (1, S, S)

    grid_spec = pltpu.PrefetchScalarGridSpec(
        num_scalar_prefetch=0,
        grid=(1,),
        in_specs=[
            pl.BlockSpec((B, S, D), lambda b: (0, 0, 0)),    # q
            pl.BlockSpec((B, S, D), lambda b: (0, 0, 0)),    # k
            pl.BlockSpec((B, S, D), lambda b: (0, 0, 0)),    # v
            pl.BlockSpec((1, S, S), lambda b: (0, 0, 0)),    # mask (resident)
        ],
        out_specs=pl.BlockSpec((B, S, D), lambda b: (0, 0, 0)),
    )

    return pl.pallas_call(
        _attn_kernel,
        out_shape=jax.ShapeDtypeStruct((B, S, D), jnp.float32),
        grid_spec=grid_spec,
        compiler_params=pltpu.CompilerParams(
            dimension_semantics=("arbitrary",),
        ),
    )(q, k, v, mask)


def _reference(q, k, v, mask):
    d = q.shape[-1]
    qk = jnp.einsum("bqd,bkd->bqk", q, k) / math.sqrt(d) + mask
    attn = jax.nn.softmax(qk, axis=-1)
    return jnp.einsum("bqk,bkd->bqd", attn, v)


if __name__ == "__main__":
    key = jax.random.PRNGKey(0)
    kq, kk, kv, km = jax.random.split(key, 4)

    B, S, D = 2, 56, 32   # S=56 mirrors the original (1, 56, 56) mask shape

    q = jax.random.normal(kq, (B, S, D), dtype=jnp.float32)
    k = jax.random.normal(kk, (B, S, D), dtype=jnp.float32)
    v = jax.random.normal(kv, (B, S, D), dtype=jnp.float32)
    # Additive attention mask: -1e9 where rand > 0.7, else 0 (mirrors the
    # global `mask` construction used as the additive bias in the reference).
    mask = jnp.where(
        jax.random.uniform(km, (1, S, S)) > 0.7, -1.0e9, 0.0
    ).astype(jnp.float32)

    out = attention(q, k, v, mask)
    out = jax.block_until_ready(out)

    ref = _reference(q, k, v, mask)
    assert out.shape == (B, S, D)
    # Tolerance covers bf16 MXU operands + approx reciprocal in the softmax.
    assert jnp.allclose(out, ref, atol=2e-2, rtol=2e-2), "mismatch vs reference"

    print("KERNEL_OK")
</pallas_src>

<mosaic_0001>
module attributes {stable_mosaic.version = 11 : i64} {
  func.func @_attn_kernel(%arg0: i32, %arg1: memref<2x56x32xf32, #tpu.memory_space<vmem>>, %arg2: memref<2x56x32xf32, #tpu.memory_space<vmem>>, %arg3: memref<2x56x32xf32, #tpu.memory_space<vmem>>, %arg4: memref<1x56x56xf32, #tpu.memory_space<vmem>>, %arg5: memref<2x56x32xf32, #tpu.memory_space<vmem>>) attributes {dimension_semantics = [#tpu.dimension_semantics<arbitrary>], iteration_bounds = array<i64: 1>, scalar_prefetch = 0 : i64, scratch_operands = 0 : i64, tpu.core_type = #tpu.core_type<tc>, window_params = [{pipeline_mode = #tpu.pipeline_mode<synchronous>, transform_indices = @transform_0, window_bounds = array<i64: 2, 56, 32>}, {pipeline_mode = #tpu.pipeline_mode<synchronous>, transform_indices = @transform_1, window_bounds = array<i64: 2, 56, 32>}, {pipeline_mode = #tpu.pipeline_mode<synchronous>, transform_indices = @transform_2, window_bounds = array<i64: 2, 56, 32>}, {pipeline_mode = #tpu.pipeline_mode<synchronous>, transform_indices = @transform_3, window_bounds = array<i64: 1, 56, 56>}, {pipeline_mode = #tpu.pipeline_mode<synchronous>, transform_indices = @transform_4, window_bounds = array<i64: 2, 56, 32>}]} {
    %c0 = arith.constant 0 : index
    %c0_0 = arith.constant 0 : index
    %c0_1 = arith.constant 0 : index
    %0 = vector.load %arg1[%c0, %c0_0, %c0_1] : memref<2x56x32xf32, #tpu.memory_space<vmem>>, vector<2x56x32xf32>
    %cst = arith.constant 0.176776692 : f32
    %1 = vector.broadcast %cst : f32 to vector<2x56x32xf32>
    %2 = arith.mulf %0, %1 : vector<2x56x32xf32>
    %3 = arith.truncf %2 : vector<2x56x32xf32> to vector<2x56x32xbf16>
    %c0_2 = arith.constant 0 : index
    %c0_3 = arith.constant 0 : index
    %c0_4 = arith.constant 0 : index
    %4 = vector.load %arg2[%c0_2, %c0_3, %c0_4] : memref<2x56x32xf32, #tpu.memory_space<vmem>>, vector<2x56x32xf32>
    %5 = arith.truncf %4 : vector<2x56x32xf32> to vector<2x56x32xbf16>
    %c0_5 = arith.constant 0 : index
    %c0_6 = arith.constant 0 : index
    %c0_7 = arith.constant 0 : index
    %6 = vector.load %arg3[%c0_5, %c0_6, %c0_7] : memref<2x56x32xf32, #tpu.memory_space<vmem>>, vector<2x56x32xf32>
    %7 = arith.truncf %6 : vector<2x56x32xf32> to vector<2x56x32xbf16>
    %c0_8 = arith.constant 0 : index
    %c0_9 = arith.constant 0 : index
    %c0_10 = arith.constant 0 : index
    %8 = vector.load %arg4[%c0_8, %c0_9, %c0_10] : memref<1x56x56xf32, #tpu.memory_space<vmem>>, vector<1x56x56xf32>
    %9 = vector.shape_cast %8 : vector<1x56x56xf32> to vector<56x56xf32>
    "tpu.trace_start"() <{level = 10 : i32, message = "bqd,bkd->bqk"}> : () -> ()
    %cst_11 = arith.constant dense<0.000000e+00> : vector<2x56x56xf32>
    %10 = tpu.matmul %3, %5, %cst_11 {dimension_numbers = #tpu.dot_dimension_numbers<[2], [2], [1], [1], [0, 0, 0, 1, 1, 1], [0], [0]>} : vector<2x56x32xbf16>, vector<2x56x32xbf16>, vector<2x56x56xf32> -> vector<2x56x56xf32>
    "tpu.trace_stop"() : () -> ()
    %11 = vector.shape_cast %9 : vector<56x56xf32> to vector<1x56x56xf32>
    %12 = vector.broadcast %11 : vector<1x56x56xf32> to vector<2x56x56xf32>
    %13 = arith.addf %10, %12 : vector<2x56x56xf32>
    %cst_12 = arith.constant dense<0xFF800000> : vector<2x56xf32>
    %14 = vector.multi_reduction <maximumf>, %13, %cst_12 [2] : vector<2x56x56xf32> to vector<2x56xf32>
    %15 = vector.shape_cast %14 : vector<2x56xf32> to vector<2x56x1xf32>
    %16 = vector.broadcast %15 : vector<2x56x1xf32> to vector<2x56x56xf32>
    %17 = arith.subf %13, %16 : vector<2x56x56xf32>
    %18 = math.exp %17 : vector<2x56x56xf32>
    %cst_13 = arith.constant dense<0.000000e+00> : vector<2x56xf32>
    %19 = vector.multi_reduction <add>, %18, %cst_13 [2] : vector<2x56x56xf32> to vector<2x56xf32>
    %20 = vector.shape_cast %19 : vector<2x56xf32> to vector<2x56x1xf32>
    %21 = tpu.reciprocal %20 {approx = true} : vector<2x56x1xf32> -> vector<2x56x1xf32>
    %22 = vector.broadcast %21 : vector<2x56x1xf32> to vector<2x56x56xf32>
    %23 = arith.mulf %18, %22 : vector<2x56x56xf32>
    %24 = arith.truncf %23 : vector<2x56x56xf32> to vector<2x56x56xbf16>
    "tpu.trace_start"() <{level = 10 : i32, message = "bqk,bkd->bqd"}> : () -> ()
    %cst_14 = arith.constant dense<0.000000e+00> : vector<2x56x32xf32>
    %25 = tpu.matmul %24, %7, %cst_14 {dimension_numbers = #tpu.dot_dimension_numbers<[2], [1], [1], [2], [0, 0, 0, 1, 1, 2], [0], [0]>} : vector<2x56x56xbf16>, vector<2x56x32xbf16>, vector<2x56x32xf32> -> vector<2x56x32xf32>
    "tpu.trace_stop"() : () -> ()
    %c0_15 = arith.constant 0 : index
    %c0_16 = arith.constant 0 : index
    %c0_17 = arith.constant 0 : index
    %26 = vector.load %arg5[%c0_15, %c0_16, %c0_17] : memref<2x56x32xf32, #tpu.memory_space<vmem>>, vector<2x56x32xf32>
    tpu.vector_store %arg5[%c0_15, %c0_16, %c0_17], %25 {strides = array<i32>} : memref<2x56x32xf32, #tpu.memory_space<vmem>>, vector<2x56x32xf32>,
    return
  }
  func.func @transform_0(%arg0: i32) -> (i32, i32, i32) {
    %c0_i32 = arith.constant 0 : i32
    %c0_i32_0 = arith.constant 0 : i32
    %c0_i32_1 = arith.constant 0 : i32
    %c0_i32_2 = arith.constant 0 : i32
    return %c0_i32, %c0_i32_0, %c0_i32_1 : i32, i32, i32
  }
  func.func @transform_1(%arg0: i32) -> (i32, i32, i32) {
    %c0_i32 = arith.constant 0 : i32
    %c0_i32_0 = arith.constant 0 : i32
    %c0_i32_1 = arith.constant 0 : i32
    %c0_i32_2 = arith.constant 0 : i32
    return %c0_i32, %c0_i32_0, %c0_i32_1 : i32, i32, i32
  }
  func.func @transform_2(%arg0: i32) -> (i32, i32, i32) {
    %c0_i32 = arith.constant 0 : i32
    %c0_i32_0 = arith.constant 0 : i32
    %c0_i32_1 = arith.constant 0 : i32
    %c0_i32_2 = arith.constant 0 : i32
    return %c0_i32, %c0_i32_0, %c0_i32_1 : i32, i32, i32
  }
  func.func @transform_3(%arg0: i32) -> (i32, i32, i32) {
    %c0_i32 = arith.constant 0 : i32
    %c0_i32_0 = arith.constant 0 : i32
    %c0_i32_1 = arith.constant 0 : i32
    %c0_i32_2 = arith.constant 0 : i32
    return %c0_i32, %c0_i32_0, %c0_i32_1 : i32, i32, i32
  }
  func.func @transform_4(%arg0: i32) -> (i32, i32, i32) {
    %c0_i32 = arith.constant 0 : i32
    %c0_i32_0 = arith.constant 0 : i32
    %c0_i32_1 = arith.constant 0 : i32
    %c0_i32_2 = arith.constant 0 : i32
    return %c0_i32, %c0_i32_0, %c0_i32_1 : i32, i32, i32
  }
}

</mosaic_0001>

<bundles_post_ra>
// kernel: tpu_custom_call.1
= control target key start
LH: loop header
LB: loop body
LE: loop exit
PB: predicated region body
PF: predicated region fallthrough
CT: control target
= control target key end

     0   :  { %vm105_vm0 = vcmask 261120   ;;  %vm282_vm1 = vcmask 457728   ;;  %vm457_vm2 = vcmask 1043456   ;;  %s1184_s1 = inlined_call_operand.vmem [shape: f32[2,56,32], index: 1, kind: input, shape index: {}]   ;;  %s1185_s0 = inlined_call_operand.vmem [shape: f32[2,56,32], index: 0, kind: input, shape index: {}]   ;;  %s1186_s3 = inlined_call_operand.vmem [shape: f32[1,56,56], index: 3, kind: input, shape index: {}]   ;;  %s1187_s2 = inlined_call_operand.vmem [shape: f32[2,56,32], index: 2, kind: input, shape index: {}]   ;;  %s1188_s4 = inlined_call_operand.vmem [shape: f32[2,56,32], index: 4, kind: output, shape index: {}]  }
   0x1   :  { %v54_v0 = vld [vmem:[%s1184_s1] sm:$0xff]  ;;  %v55_v1 = vld [vmem:[%s1184_s1 + $0x8] sm:$0xff]  ;;  %v61_v2 = vld [vmem:[%s1184_s1 + $0x38] sm:$0xff] }
   0x2   :  { %v68_v3 = vpack.c.bf16 %v55_v1, %v54_v0  ;;  %v62_v4 = vld [vmem:[%s1184_s1 + $0x40] sm:$0xff]  ;;  %v56_v5 = vld [vmem:[%s1184_s1 + $0x10] sm:$0xff]  ;;  %v57_v6 = vld [vmem:[%s1184_s1 + $0x18] sm:$0xff] }
   0x3   :  { %v72_v7 = vpack.c.bf16 %v62_v4, %v61_v2  ;;  %v69_v8 = vpack.c.bf16 %v57_v6, %v56_v5  ;;  %v63_v9 = vld [vmem:[%s1184_s1 + $0x48] sm:$0xff]  ;;  %v64_v10 = vld [vmem:[%s1184_s1 + $0x50] sm:$0xff]  ;;  %v18_v14 = vld [vmem:[%s1185_s0] sm:$0xff] }
   0x4   :  { %734 = vmatprep.subr.msk.bf16.mxu0 %vm105_vm0, %v68_v3  ;;  %v119_v11 = vsel %vm105_vm0, %v68_v3, 0  ;;  %v73_v12 = vpack.c.bf16 %v64_v10, %v63_v9  ;;  %v19_v15 = vld [vmem:[%s1185_s0 + $0x8] sm:$0xff]  ;;  %v32_v16 = vmul.f32 0.17677669, %v18_v14  ;;  %v25_v17 = vld [vmem:[%s1185_s0 + $0x38] sm:$0xff]  ;;  %v26_v18 = vld [vmem:[%s1185_s0 + $0x40] sm:$0xff] }
   0x5   :  { %738 = vmatprep.subr.msk.bf16.mxu1 %vm105_vm0, %v72_v7  ;;  %671 = vmatpush3.bf16.xpose.msra.mxu0 %v119_v11  ;;  %v207_v13 = vsel %vm105_vm0, %v72_v7, 0  ;;  %v58_v19 = vld [vmem:[%s1184_s1 + $0x20] sm:$0xff]  ;;  %v59_v20 = vld [vmem:[%s1184_s1 + $0x28] sm:$0xff]  ;;  %v33_v21 = vmul.f32 0.17677669, %v19_v15  ;;  %v65_v23 = vld [vmem:[%s1184_s1 + $0x58] sm:$0xff] }
   0x6   :  { %687 = vmatpush3.bf16.xpose.msra.mxu1 %v207_v13  ;;  %735 = vmatprep.subr.msk.bf16.mxu0 %vm105_vm0, %v69_v8  ;;  %v39_v22 = vmul.f32 0.17677669, %v25_v17  ;;  %v66_v24 = vld [vmem:[%s1184_s1 + $0x60] sm:$0xff]  ;;  %v40_v25 = vmul.f32 0.17677669, %v26_v18  ;;  %v122_v27 = vsel %vm105_vm0, %v69_v8, 0  ;;  %v70_v28 = vpack.c.bf16 %v59_v20, %v58_v19 }
   0x7   :  { %739 = vmatprep.subr.msk.bf16.mxu1 %vm105_vm0, %v73_v12  ;;  %v46_v26 = vpack.c.bf16 %v33_v21, %v32_v16  ;;  %v210_v30 = vsel %vm105_vm0, %v73_v12, 0  ;;  %v74_v31 = vpack.c.bf16 %v66_v24, %v65_v23  ;;  %v60_v32 = vld [vmem:[%s1184_s1 + $0x30] sm:$0xff]  ;;  %v67_v33 = vld [vmem:[%s1184_s1 + $0x68] sm:$0xff]  ;;  %v21_v39 = vld [vmem:[%s1185_s0 + $0x18] sm:$0xff] }
   0x8   :  { %v50_v29 = vpack.c.bf16 %v40_v25, %v39_v22  ;;  %v125_v34 = vsel %vm105_vm0, %v70_v28, 0  ;;  %v71_v35 = vpack.c.bf16 %v60_v32, %v60_v32  ;;  %v75_v37 = vpack.c.bf16 %v67_v33, %v67_v33  ;;  %v20_v38 = vld [vmem:[%s1185_s0 + $0x10] sm:$0xff]  ;;  %v27_v40 = vld [vmem:[%s1185_s0 + $0x48] sm:$0xff]  ;;  %v22_v43 = vld [vmem:[%s1185_s0 + $0x20] sm:$0xff] }
   0x9   :  { %678 = vmatprep.mubr.msk.bf16.mxu0 %vm105_vm0, %v46_v26  ;;  %v213_v36 = vsel %vm105_vm0, %v74_v31, 0  ;;  %v28_v42 = vld [vmem:[%s1185_s0 + $0x50] sm:$0xff]  ;;  %v23_v44 = vld [vmem:[%s1185_s0 + $0x28] sm:$0xff]  ;;  %v29_v46 = vld [vmem:[%s1185_s0 + $0x58] sm:$0xff]  ;;  %v34_v48 = vmul.f32 0.17677669, %v20_v38 }
   0xa   :  { %694 = vmatprep.mubr.msk.bf16.mxu1 %vm105_vm0, %v50_v29  ;;  %v128_v41 = vsel %vm105_vm0, %v71_v35, 0  ;;  %v216_v45 = vsel %vm105_vm0, %v75_v37, 0  ;;  %v30_v47 = vld [vmem:[%s1185_s0 + $0x60] sm:$0xff]  ;;  %v35_v49 = vmul.f32 0.17677669, %v21_v39  ;;  %v24_v59 = vld [vmem:[%s1185_s0 + $0x30] sm:$0xff] }
   0xb   :  { %v41_v50 = vmul.f32 0.17677669, %v27_v40  ;;  %v42_v51 = vmul.f32 0.17677669, %v28_v42  ;;  %v36_v52 = vmul.f32 0.17677669, %v22_v43 }
   0xc   :  { %v37_v53 = vmul.f32 0.17677669, %v23_v44  ;;  %v43_v54 = vmul.f32 0.17677669, %v29_v46  ;;  %v44_v55 = vmul.f32 0.17677669, %v30_v47  ;;  %v47_v56 = vpack.c.bf16 %v35_v49, %v34_v48 }
   0xd   :  { %673 = vmatpush3.bf16.xpose.msra.mxu0 %v122_v27  ;;  %v51_v57 = vpack.c.bf16 %v42_v51, %v41_v50  ;;  %v31_v61 = vld [vmem:[%s1185_s0 + $0x68] sm:$0xff]  ;;  %v38_v62 = vmul.f32 0.17677669, %v24_v59  ;;  %v100_v2 = vld [vmem:[%s1186_s3 + $0x10] sm:$0xff]  ;;  %v98_v4 = vld [vmem:[%s1186_s3] sm:$0xff] }
   0xe   :  { %689 = vmatpush3.bf16.xpose.msra.mxu1 %v210_v30  ;;  %736 = vmatprep.subr.msk.bf16.mxu0 %vm105_vm0, %v70_v28  ;;  %v48_v58 = vpack.c.bf16 %v37_v53, %v36_v52  ;;  %v52_v60 = vpack.c.bf16 %v44_v55, %v43_v54  ;;  %v45_v63 = vmul.f32 0.17677669, %v31_v61  ;;  %v101_v9 = vld [vmem:[%s1186_s3 + $0x18] sm:$0xff]  ;;  %v99_v21 = vld [vmem:[%s1186_s3 + $0x8] sm:$0xff]  ;;  %v102_v27 = vld [vmem:[%s1186_s3 + $0x20] sm:$0xff] }
   0xf   :  { %740 = vmatprep.subr.msk.bf16.mxu1 %vm105_vm0, %v74_v31  ;;  %v49_v0 = vpack.c.bf16 %v38_v62, %v38_v62  ;;  %v104_v46 = vld [vmem:[%s1186_s3 + $0x30] sm:$0xff] }
  0x10   :  { %v53_v1 = vpack.c.bf16 %v45_v63, %v45_v63 }
  0x15   :  { %675 = vmatpush3.bf16.xpose.msra.mxu0 %v125_v34  ;;  %v103_v34 = vld [vmem:[%s1186_s3 + $0x28] sm:$0xff] }
  0x16   :  { %691 = vmatpush3.bf16.xpose.msra.mxu1 %v213_v36  ;;  %737 = vmatprep.subr.msk.bf16.mxu0 %vm105_vm0, %v71_v35 }
  0x17   :  { %741 = vmatprep.subr.msk.bf16.mxu1 %vm105_vm0, %v75_v37 }
  0x1d   :  { %677 = vmatpush3.bf16.xpose.msra.mxu0 %v128_v41 }
  0x1e   :  { %693 = vmatpush3.bf16.xpose.msra.mxu1 %v216_v45 }
  0x24   :  { %679 = vmatmul.mubr.msk.bf16.vlgmr.msra.gmra.mrb[0].mxu0 %vm105_vm0, %v47_v56 }
  0x25   :  { %695 = vmatmul.mubr.msk.bf16.vlgmr.msra.gmra.mrb[0].mxu1 %vm105_vm0, %v51_v57  ;;  %682 = vmatprep.mubr.msk.bf16.mxu0 %vm105_vm0, %v48_v58 }
  0x26   :  { %698 = vmatprep.mubr.msk.bf16.mxu1 %vm105_vm0, %v52_v60 }
  0x2c   :  { %683 = vmatmul.mubr.msk.bf16.gmra.mrb[4].mxu0 %vm105_vm0, %v49_v0 }
  0x2d   :  { %699 = vmatmul.mubr.msk.bf16.gmra.mrb[4].mxu1 %vm105_vm0, %v53_v1 }
  0xf7   :  { %v680_v3 = vpop.f32.mrb[0].mxu0 }
  0xf8   :  { %v939_v5 = vadd.f32 %v680_v3, %v100_v2  ;;  %v696_v6 = vpop.f32.mrb[0].mxu1  ;;  %v164_v7 = vpop.f32.mrb[1].mxu0 }
  0xf9   :  { %v252_v8 = vpop.f32.mrb[1].mxu1  ;;  %v681_v10 = vpop.f32.mrb[2].mxu0  ;;  %v944_v11 = vadd.f32 %v696_v6, %v100_v2  ;;  %v952_v19 = vadd.f32 %v164_v7, %v98_v4 }
  0xfa   :  { %v946_v12 = vadd.f32 %v252_v8, %v98_v4  ;;  %v697_v13 = vpop.f32.mrb[2].mxu1  ;;  %v167_v14 = vpop.f32.mrb[3].mxu0  ;;  %v289_v15 = vsel %vm282_vm1, %v939_v5, -inf  ;;  %v176_v17 = vadd.f32 %v681_v10, %v101_v9 }
  0xfb   :  { %v255_v16 = vpop.f32.mrb[3].mxu1  ;;  %290 = vmax.xlane.f32.xlu0 %v289_v15  ;;  %v310_v20 = vsel %vm282_vm1, %v944_v11, -inf  ;;  %v959_v23 = vadd.f32 %v697_v13, %v101_v9  ;;  %v168_v30 = vadd.f32 %v167_v14, %v99_v21  ;;  %v283_v31 = vsel %vm282_vm1, %v952_v19, -inf }
  0xfc   :  { %v304_v18 = vsel %vm282_vm1, %v946_v12, -inf  ;;  %v292_v24 = vsel %vm282_vm1, %v176_v17, -inf  ;;  %v256_v36 = vadd.f32 %v255_v16, %v99_v21 }
  0xfd   :  { %305 = vmax.xlane.f32.xlu1 %v304_v18  ;;  %v313_v37 = vsel %vm282_vm1, %v959_v23, -inf  ;;  %v286_v39 = vsel %vm282_vm1, %v168_v30, -inf }
  0xfe   :  { %v307_v41 = vsel %vm282_vm1, %v256_v36, -inf }
  0xff   :  { %311 = vmax.xlane.f32.xlu0 %v310_v20  ;;  %v684_v22 = vpop.f32.mrb[4].mxu0 }
 0x100   :  { %v180_v25 = vpop.f32.mrb[5].mxu0  ;;  %v700_v26 = vpop.f32.mrb[4].mxu1  ;;  %v988_v48 = vadd.f32 %v684_v22, %v104_v46 }
 0x101   :  { %293 = vmax.xlane.f32.xlu1 %v292_v24  ;;  %v685_v28 = vpop.f32.mrb[6].mxu0  ;;  %v268_v29 = vpop.f32.mrb[5].mxu1  ;;  %v181_v38 = vadd.f32 %v180_v25, %v102_v27  ;;  %v992_v50 = vadd.f32 %v700_v26, %v104_v46 }
 0x102   :  { %v183_v32 = vpop.f32.mrb[7].mxu0  ;;  %v701_v33 = vpop.f32.mrb[6].mxu1  ;;  %v976_v42 = vadd.f32 %v268_v29, %v102_v27  ;;  %v301_v51 = vsel %vm282_vm1, %v988_v48, -inf }
 0x103   :  { %284 = vmax.xlane.f32.xlu0 %v283_v31  ;;  %v271_v35 = vpop.f32.mrb[7].mxu1  ;;  %v973_v40 = vadd.f32 %v183_v32, %v103_v34  ;;  %v295_v43 = vsel %vm282_vm1, %v181_v38, -inf  ;;  %v322_v52 = vsel %vm282_vm1, %v992_v50, -inf }
 0x104   :  { %v979_v44 = vadd.f32 %v271_v35, %v103_v34  ;;  %v316_v47 = vsel %vm282_vm1, %v976_v42, -inf }
 0x105   :  { %314 = vmax.xlane.f32.xlu1 %v313_v37  ;;  %v298_v45 = vsel %vm282_vm1, %v973_v40, -inf }
 0x106   :  { %v319_v49 = vsel %vm282_vm1, %v979_v44, -inf }
 0x107   :  { %287 = vmax.xlane.f32.xlu0 %v286_v39 }
 0x109   :  { %308 = vmax.xlane.f32.xlu1 %v307_v41 }
 0x10b   :  { %296 = vmax.xlane.f32.xlu0 %v295_v43 }
 0x10d   :  { %299 = vmax.xlane.f32.xlu1 %v298_v45 }
 0x10f   :  { %317 = vmax.xlane.f32.xlu0 %v316_v47 }
 0x111   :  { %320 = vmax.xlane.f32.xlu1 %v319_v49 }
 0x113   :  { %302 = vmax.xlane.f32.xlu0 %v301_v51 }
 0x115   :  { %323 = vmax.xlane.f32.xlu1 %v322_v52 }
 0x188   :  { %v291_v53 = vpop.xlane.xlu0 %290 }
 0x189   :  { %v327_v54 = vsub.f32 %v939_v5, %v291_v53 }
 0x18a   :  { %v306_v55 = vpop.xlane.xlu1 %305 }
 0x18b   :  { %v343_v56 = vmul.f32 1.442695, %v327_v54  ;;  %v332_v59 = vsub.f32 %v946_v12, %v306_v55 }
 0x18c   :  { %v312_v57 = vpop.xlane.xlu0 %311 }
 0x18d   :  { %744 = vpow2.f32 %v343_v56  ;;  %v334_v58 = vsub.f32 %v944_v11, %v312_v57  ;;  %v353_v2 = vmul.f32 1.442695, %v332_v59  ;;  %v76_v57 = vld [vmem:[%s1187_s2] sm:$0xff] }
 0x18e   :  { %v294_v60 = vpop.xlane.xlu1 %293 }
 0x18f   :  { %v357_v61 = vmul.f32 1.442695, %v334_v58  ;;  %v328_v62 = vsub.f32 %v176_v17, %v294_v60  ;;  %v77_v58 = vld [vmem:[%s1187_s2 + $0x8] sm:$0xff] }
 0x190   :  { %v285_v63 = vpop.xlane.xlu0 %284  ;;  %v90_v60 = vpack.c.bf16 %v77_v58, %v76_v57 }
 0x191   :  { %746 = vpow2.f32 %v357_v61  ;;  %v345_v0 = vmul.f32 1.442695, %v328_v62  ;;  %v325_v1 = vsub.f32 %v952_v19, %v285_v63  ;;  %v78_v62 = vld [vmem:[%s1187_s2 + $0x10] sm:$0xff]  ;;  %v79_v63 = vld [vmem:[%s1187_s2 + $0x18] sm:$0xff] }
 0x192   :  { %v315_v3 = vpop.xlane.xlu1 %314  ;;  %702 = vmatprep.subr.bf16.mxu0 %v90_v60 }
 0x193   :  { %748 = vpow2.f32 %v345_v0  ;;  %v339_v4 = vmul.f32 1.442695, %v325_v1  ;;  %v335_v5 = vsub.f32 %v959_v23, %v315_v3  ;;  %703 = vmatpush3.bf16.msra.mxu0 %v90_v60  ;;  %v83_v0 = vld [vmem:[%s1187_s2 + $0x38] sm:$0xff]  ;;  %v91_v1 = vpack.c.bf16 %v79_v63, %v78_v62 }
 0x194   :  { %v288_v6 = vpop.xlane.xlu0 %287 }
 0x195   :  { %750 = vpow2.f32 %v339_v4  ;;  %v359_v7 = vmul.f32 1.442695, %v335_v5  ;;  %v326_v8 = vsub.f32 %v168_v30, %v288_v6  ;;  %704 = vmatprep.subr.bf16.mxu0 %v91_v1  ;;  %v80_v4 = vld [vmem:[%s1187_s2 + $0x20] sm:$0xff]  ;;  %v81_v5 = vld [vmem:[%s1187_s2 + $0x28] sm:$0xff] }
 0x196   :  { %752 = vpow2.f32 %v353_v2  ;;  %v309_v9 = vpop.xlane.xlu1 %308  ;;  %v84_v2 = vld [vmem:[%s1187_s2 + $0x40] sm:$0xff]  ;;  %v85_v6 = vld [vmem:[%s1187_s2 + $0x48] sm:$0xff] }
 0x197   :  { %v1003_v10 = vpop.eup %744  ;;  %754 = vpow2.f32 %v359_v7  ;;  %v341_v11 = vmul.f32 1.442695, %v326_v8  ;;  %v333_v12 = vsub.f32 %v256_v36, %v309_v9  ;;  %v94_v3 = vpack.c.bf16 %v84_v2, %v83_v0  ;;  %705 = vmatpush3.bf16.msra.mxu0 %v91_v1  ;;  %v86_v8 = vld [vmem:[%s1187_s2 + $0x50] sm:$0xff] }
 0x198   :  { %v297_v13 = vpop.xlane.xlu0 %296  ;;  %v373_v14 = vsel %vm282_vm1, %v1003_v10, 0.0  ;;  %v92_v7 = vpack.c.bf16 %v81_v5, %v80_v4  ;;  %v95_v9 = vpack.c.bf16 %v86_v8, %v85_v6 }
 0x199   :  { %756 = vpow2.f32 %v341_v11  ;;  %v355_v15 = vmul.f32 1.442695, %v333_v12  ;;  %v329_v16 = vsub.f32 %v181_v38, %v297_v13  ;;  %374 = vadd.xlane.f32.xlu0 %v373_v14  ;;  %718 = vmatprep.subr.bf16.mxu1 %v94_v3  ;;  %v82_v11 = vld [vmem:[%s1187_s2 + $0x30] sm:$0xff]  ;;  %v87_v12 = vld [vmem:[%s1187_s2 + $0x58] sm:$0xff]  ;;  %v88_v13 = vld [vmem:[%s1187_s2 + $0x60] sm:$0xff] }
 0x19a   :  { %v300_v17 = vpop.xlane.xlu1 %299  ;;  %719 = vmatpush3.bf16.msra.mxu1 %v94_v3  ;;  %706 = vmatprep.subr.bf16.mxu0 %v92_v7  ;;  %v93_v14 = vpack.c.bf16 %v82_v11, %v82_v11 }
 0x19b   :  { %v1007_v18 = vpop.eup %746  ;;  %v347_v19 = vmul.f32 1.442695, %v329_v16  ;;  %v330_v20 = vsub.f32 %v973_v40, %v300_v17  ;;  %758 = vpow2.f32 %v355_v15  ;;  %720 = vmatprep.subr.bf16.mxu1 %v95_v9  ;;  %707 = vmatpush3.bf16.msra.mxu0 %v92_v7  ;;  %v96_v15 = vpack.c.bf16 %v88_v13, %v87_v12  ;;  %v89_v17 = vld [vmem:[%s1187_s2 + $0x68] sm:$0xff] }
 0x19c   :  { %v318_v21 = vpop.xlane.xlu0 %317  ;;  %v394_v22 = vsel %vm282_vm1, %v1007_v18, 0.0  ;;  %742 = vmatprep.subr.msk.bf16.mxu0 %vm457_vm2, %v93_v14  ;;  %v459_v16 = vsel %vm457_vm2, %v93_v14, 0 }
 0x19d   :  { %v1012_v23 = vpop.eup %748  ;;  %760 = vpow2.f32 %v347_v19  ;;  %v349_v24 = vmul.f32 1.442695, %v330_v20  ;;  %v336_v25 = vsub.f32 %v976_v42, %v318_v21  ;;  %395 = vadd.xlane.f32.xlu0 %v394_v22  ;;  %v97_v19 = vpack.c.bf16 %v89_v17, %v89_v17 }
 0x19e   :  { %v321_v26 = vpop.xlane.xlu1 %320  ;;  %v376_v27 = vsel %vm282_vm1, %v1012_v23, 0.0  ;;  %721 = vmatpush3.bf16.msra.mxu1 %v95_v9 }
 0x19f   :  { %v1017_v28 = vpop.eup %750  ;;  %v361_v29 = vmul.f32 1.442695, %v336_v25  ;;  %v337_v30 = vsub.f32 %v979_v44, %v321_v26  ;;  %377 = vadd.xlane.f32.xlu1 %v376_v27  ;;  %762 = vpow2.f32 %v349_v24  ;;  %722 = vmatprep.subr.bf16.mxu1 %v96_v15  ;;  %v538_v20 = vsel %vm457_vm2, %v97_v19, 0 }
 0x1a0   :  { %v1020_v31 = vpop.eup %752  ;;  %v303_v32 = vpop.xlane.xlu0 %302  ;;  %v367_v33 = vsel %vm282_vm1, %v1017_v28, 0.0  ;;  %709 = vmatpush3.bf16.msra.mxu0 %v459_v16 }
 0x1a1   :  { %v1024_v34 = vpop.eup %754  ;;  %764 = vpow2.f32 %v361_v29  ;;  %v363_v35 = vmul.f32 1.442695, %v337_v30  ;;  %v331_v36 = vsub.f32 %v988_v48, %v303_v32  ;;  %368 = vadd.xlane.f32.xlu0 %v367_v33  ;;  %v388_v42 = vsel %vm282_vm1, %v1020_v31, 0.0 }
 0x1a2   :  { %v324_v37 = vpop.xlane.xlu1 %323  ;;  %v397_v38 = vsel %vm282_vm1, %v1024_v34, 0.0  ;;  %723 = vmatpush3.bf16.msra.mxu1 %v96_v15 }
 0x1a3   :  { %v1029_v39 = vpop.eup %756  ;;  %v351_v40 = vmul.f32 1.442695, %v331_v36  ;;  %v338_v41 = vsub.f32 %v992_v50, %v324_v37  ;;  %398 = vadd.xlane.f32.xlu1 %v397_v38  ;;  %766 = vpow2.f32 %v363_v35  ;;  %743 = vmatprep.subr.msk.bf16.mxu1 %vm457_vm2, %v97_v19 }
 0x1a4   :  { %v370_v43 = vsel %vm282_vm1, %v1029_v39, 0.0 }
 0x1a5   :  { %768 = vpow2.f32 %v351_v40  ;;  %v365_v44 = vmul.f32 1.442695, %v338_v41  ;;  %389 = vadd.xlane.f32.xlu0 %v388_v42  ;;  %v1036_v45 = vpop.eup %758 }
 0x1a6   :  { %v391_v49 = vsel %vm282_vm1, %v1036_v45, 0.0  ;;  %725 = vmatpush3.bf16.msra.mxu1 %v538_v20 }
 0x1a7   :  { %v1038_v46 = vpop.eup %760  ;;  %371 = vadd.xlane.f32.xlu1 %v370_v43  ;;  %770 = vpow2.f32 %v365_v44 }
 0x1a8   :  { %v379_v47 = vsel %vm282_vm1, %v1038_v46, 0.0 }
 0x1a9   :  { %380 = vadd.xlane.f32.xlu0 %v379_v47  ;;  %v1042_v48 = vpop.eup %762 }
 0x1aa   :  { %v382_v53 = vsel %vm282_vm1, %v1042_v48, 0.0 }
 0x1ab   :  { %v1046_v50 = vpop.eup %764  ;;  %392 = vadd.xlane.f32.xlu1 %v391_v49 }
 0x1ac   :  { %v400_v51 = vsel %vm282_vm1, %v1046_v50, 0.0 }
 0x1ad   :  { %401 = vadd.xlane.f32.xlu0 %v400_v51  ;;  %v1050_v52 = vpop.eup %766 }
 0x1ae   :  { %v403_v56 = vsel %vm282_vm1, %v1050_v52, 0.0 }
 0x1af   :  { %v1054_v54 = vpop.eup %768  ;;  %383 = vadd.xlane.f32.xlu1 %v382_v53 }
 0x1b0   :  { %v385_v55 = vsel %vm282_vm1, %v1054_v54, 0.0 }
 0x1b1   :  { %386 = vadd.xlane.f32.xlu0 %v385_v55  ;;  %v1066_v59 = vpop.eup %770 }
 0x1b2   :  { %v406_v61 = vsel %vm282_vm1, %v1066_v59, 0.0 }
 0x1b3   :  { %404 = vadd.xlane.f32.xlu1 %v403_v56 }
 0x1b7   :  { %407 = vadd.xlane.f32.xlu1 %v406_v61 }
 0x226   :  { %v375_v21 = vpop.xlane.xlu0 %374 }
 0x22a   :  { %v396_v22 = vpop.xlane.xlu0 %395 }
 0x22c   :  { %v378_v24 = vpop.xlane.xlu1 %377 }
 0x22d   :  { %772 = vrcp.f32 %v378_v24 }
 0x22e   :  { %v369_v25 = vpop.xlane.xlu0 %368 }
 0x22f   :  { %774 = vrcp.f32 %v369_v25 }
 0x230   :  { %v399_v26 = vpop.xlane.xlu1 %398  ;;  %776 = vrcp.f32 %v375_v21 }
 0x232   :  { %v390_v27 = vpop.xlane.xlu0 %389 }
 0x234   :  { %v372_v29 = vpop.xlane.xlu1 %371 }
 0x235   :  { %778 = vrcp.f32 %v372_v29 }
 0x236   :  { %780 = vrcp.f32 %v399_v26  ;;  %v381_v30 = vpop.xlane.xlu0 %380 }
 0x237   :  { %782 = vrcp.f32 %v390_v27  ;;  %v773_v35 = vpop.eup %772 }
 0x238   :  { %784 = vrcp.f32 %v396_v22  ;;  %v393_v32 = vpop.xlane.xlu1 %392  ;;  %v426_v42 = vmul.f32 %v773_v35, %v1012_v23 }
 0x239   :  { %786 = vrcp.f32 %v393_v32  ;;  %v775_v37 = vpop.eup %774 }
 0x23a   :  { %v402_v33 = vpop.xlane.xlu0 %401  ;;  %788 = vrcp.f32 %v381_v30  ;;  %v777_v38 = vpop.eup %776  ;;  %v423_v47 = vmul.f32 %v775_v37, %v1017_v28 }
 0x23b   :  { %v425_v53 = vmul.f32 %v777_v38, %v1003_v10 }
 0x23c   :  { %v384_v36 = vpop.xlane.xlu1 %383 }
 0x23d   :  { %790 = vrcp.f32 %v384_v36  ;;  %v438_v58 = vpack.c.bf16 %v426_v42, %v425_v53 }
 0x23e   :  { %792 = vrcp.f32 %v402_v33  ;;  %v387_v40 = vpop.xlane.xlu0 %386 }
 0x23f   :  { %v779_v41 = vpop.eup %778  ;;  %794 = vrcp.f32 %v387_v40 }
 0x240   :  { %v781_v43 = vpop.eup %780  ;;  %v405_v44 = vpop.xlane.xlu1 %404  ;;  %v424_v49 = vmul.f32 %v779_v41, %v1029_v39 }
 0x241   :  { %v783_v51 = vpop.eup %782  ;;  %796 = vrcp.f32 %v405_v44  ;;  %v433_v60 = vmul.f32 %v781_v43, %v1024_v34 }
 0x242   :  { %v785_v55 = vpop.eup %784  ;;  %v437_v56 = vpack.c.bf16 %v424_v49, %v423_v47  ;;  %v430_v23 = vmul.f32 %v783_v51, %v1020_v31 }
 0x243   :  { %v787_v57 = vpop.eup %786  ;;  %v432_v39 = vmul.f32 %v785_v55, %v1007_v18 }
 0x244   :  { %v408_v61 = vpop.xlane.xlu1 %407  ;;  %710 = vmatprep.mubr.msk.bf16.mxu0 %vm282_vm1, %v437_v56  ;;  %v431_v62 = vmul.f32 %v787_v57, %v1036_v45  ;;  %v789_v28 = vpop.eup %788 }
 0x245   :  { %798 = vrcp.f32 %v408_v61  ;;  %711 = vmatmul.mubr.msk.bf16.vlgmr.msra.gmra.mrb[8].mxu0 %vm282_vm1, %v438_v58  ;;  %v442_v0 = vpack.c.bf16 %v433_v60, %v432_v39  ;;  %v427_v34 = vmul.f32 %v789_v28, %v1038_v46 }
 0x246   :  { %v441_v10 = vpack.c.bf16 %v431_v62, %v430_v23 }
 0x247   :  { %v791_v63 = vpop.eup %790 }
 0x248   :  { %v793_v1 = vpop.eup %792  ;;  %726 = vmatprep.mubr.msk.bf16.mxu1 %vm282_vm1, %v441_v10  ;;  %v428_v2 = vmul.f32 %v791_v63, %v1042_v48 }
 0x249   :  { %v795_v3 = vpop.eup %794  ;;  %727 = vmatmul.mubr.msk.bf16.vlgmr.msra.gmra.mrb[8].mxu1 %vm282_vm1, %v442_v0  ;;  %v434_v5 = vmul.f32 %v793_v1, %v1046_v50 }
 0x24a   :  { %v439_v31 = vpack.c.bf16 %v428_v2, %v427_v34  ;;  %v429_v45 = vmul.f32 %v795_v3, %v1054_v54 }
 0x24b   :  { %v797_v18 = vpop.eup %796 }
 0x24c   :  { %714 = vmatprep.mubr.msk.bf16.mxu0 %vm282_vm1, %v439_v31  ;;  %v440_v4 = vpack.c.bf16 %v429_v45, %v429_v45  ;;  %v435_v6 = vmul.f32 %v797_v18, %v1050_v52 }
 0x24e   :  { %715 = vmatmul.mubr.msk.bf16.gmra.mrb[12].mxu0 %vm282_vm1, %v440_v4  ;;  %v443_v7 = vpack.c.bf16 %v435_v6, %v434_v5 }
 0x24f   :  { %v799_v46 = vpop.eup %798 }
 0x250   :  { %730 = vmatprep.mubr.msk.bf16.mxu1 %vm282_vm1, %v443_v7  ;;  %v436_v48 = vmul.f32 %v799_v46, %v1066_v59 }
 0x252   :  { %v444_v8 = vpack.c.bf16 %v436_v48, %v436_v48 }
 0x254   :  { %731 = vmatmul.mubr.msk.bf16.gmra.mrb[12].mxu1 %vm282_vm1, %v444_v8 }
 0x318   :  { %v712_v54 = vpop.f32.mrb[8].mxu0 }
 0x319   :  { %606 = vst.msk [vmem:[%s1188_s4 + $0x10] sm:$0xff] %vm105_vm0, %v712_v54  ;;  %v495_v50 = vpop.f32.mrb[9].mxu0 }
 0x31a   :  { %604 = vst.msk [vmem:[%s1188_s4] sm:$0xff] %vm105_vm0, %v495_v50  ;;  %v713_v52 = vpop.f32.mrb[10].mxu0 }
 0x31b   :  { %607 = vst.msk [vmem:[%s1188_s4 + $0x18] sm:$0xff] %vm105_vm0, %v713_v52  ;;  %v498_v59 = vpop.f32.mrb[11].mxu0 }
 0x31c   :  { %605 = vst.msk [vmem:[%s1188_s4 + $0x8] sm:$0xff] %vm105_vm0, %v498_v59  ;;  %v728_v9 = vpop.f32.mrb[8].mxu1 }
 0x31d   :  { %613 = vst.msk [vmem:[%s1188_s4 + $0x48] sm:$0xff] %vm105_vm0, %v728_v9  ;;  %v574_v11 = vpop.f32.mrb[9].mxu1 }
 0x31e   :  { %611 = vst.msk [vmem:[%s1188_s4 + $0x38] sm:$0xff] %vm105_vm0, %v574_v11  ;;  %v729_v12 = vpop.f32.mrb[10].mxu1 }
 0x31f   :  { %614 = vst.msk [vmem:[%s1188_s4 + $0x50] sm:$0xff] %vm105_vm0, %v729_v12  ;;  %v577_v13 = vpop.f32.mrb[11].mxu1 }
 0x320   :  { %612 = vst.msk [vmem:[%s1188_s4 + $0x40] sm:$0xff] %vm105_vm0, %v577_v13 }
 0x321   :  { %v716_v14 = vpop.f32.mrb[12].mxu0 }
 0x322   :  { %610 = vst.msk [vmem:[%s1188_s4 + $0x30] sm:$0xff] %vm105_vm0, %v716_v14  ;;  %v511_v15 = vpop.f32.mrb[13].mxu0 }
 0x323   :  { %608 = vst.msk [vmem:[%s1188_s4 + $0x20] sm:$0xff] %vm105_vm0, %v511_v15  ;;  %v717_v16 = vpop.f32.mrb[14].mxu0 }
 0x324   :  { %v514_v17 = vpop.f32.mrb[15].mxu0 }
 0x325   :  { %609 = vst.msk [vmem:[%s1188_s4 + $0x28] sm:$0xff] %vm105_vm0, %v514_v17 }
 0x327   :  { %v732_v19 = vpop.f32.mrb[12].mxu1 }
 0x328   :  { %617 = vst.msk [vmem:[%s1188_s4 + $0x68] sm:$0xff] %vm105_vm0, %v732_v19  ;;  %v590_v20 = vpop.f32.mrb[13].mxu1 }
 0x329   :  { %615 = vst.msk [vmem:[%s1188_s4 + $0x58] sm:$0xff] %vm105_vm0, %v590_v20  ;;  %v733_v21 = vpop.f32.mrb[14].mxu1 }
 0x32a   :  { %v593_v22 = vpop.f32.mrb[15].mxu1 }
 0x32b   :  { %616 = vst.msk [vmem:[%s1188_s4 + $0x60] sm:$0xff] %vm105_vm0, %v593_v22 }

</bundles_post_ra>
